<compile_context>
chip_gen: v7x
topology: tpu7x:2x2x1
jax: 0.10.0
libtpu: 0.0.40
codegen_flags: <defaults>
</compile_context>

<pallas_src>
import functools

import numpy as np
import jax
import jax.numpy as jnp
from jax.experimental import pallas as pl
from jax.experimental.pallas import tpu as pltpu

EPS = 1e-5


# ---------------------------------------------------------------------------
# Host-side (one-time) weight re-layout.
# ---------------------------------------------------------------------------
def _conv3x3_to_band(w_oihw, W):
    """PyTorch (Cout,Cin,3,3) conv weight -> banded matmul weight (3, W*Cin, W*Cout).

    For output slab rows r=(n,h) and columns (wo,co):
        out[r, wo*Cout+co] = sum_dy  A_dy[r, :] @ B[dy]
    where A_dy[r, wi*Cin+ci] = x[n, h+dy-1, wi, ci]  (zero-padded in H only).
    The dx shifts and W-boundary zero padding are encoded in the band structure.
    """
    Cout, Cin = int(w_oihw.shape[0]), int(w_oihw.shape[1])
    w = np.asarray(w_oihw, np.float32)
    B = np.zeros((3, W * Cin, W * Cout), np.float32)
    for dy in range(3):
        for dx in range(3):
            tap = w[:, :, dy, dx].T  # (Cin, Cout)
            for wo in range(W):
                wi = wo + dx - 1
                if 0 <= wi < W:
                    B[dy, wi * Cin:(wi + 1) * Cin, wo * Cout:(wo + 1) * Cout] = tap
    return B


def _conv1x1_to_block(w_oi11, W):
    """PyTorch (Cout,Cin,1,1) weight -> block-diagonal (W*Cin, W*Cout) matmul weight."""
    Cout, Cin = int(w_oi11.shape[0]), int(w_oi11.shape[1])
    w = np.asarray(w_oi11, np.float32)[:, :, 0, 0].T  # (Cin, Cout)
    S = np.zeros((W * Cin, W * Cout), np.float32)
    for wo in range(W):
        S[wo * Cin:(wo + 1) * Cin, wo * Cout:(wo + 1) * Cout] = w
    return S


# ---------------------------------------------------------------------------
# Kernel
# ---------------------------------------------------------------------------
def _resblock_kernel(x_ref, b1_ref, b2_ref, s_ref, q_ref,
                     g1_ref, be1_ref, g2_ref, be2_ref, gs_ref, bes_ref,
                     out_ref, xpad_scr, hpad_scr,
                     *, N, H, W, Cin, Cout):
    f32 = jnp.float32
    NH = N * H
    WCi = W * Cin
    WCo = W * Cout
    inv_n = 1.0 / float(N * H * W)

    q_mat = q_ref[...]  # (WCo, WCo) 0/1 channel-gather matrix, loaded once

    def bn_fold(y, g_w, beta_w):
        # Training-mode BN per channel in one pass: var = E[x^2] - mean^2, with
        # gamma/beta folded so the apply is a single mul+add per element.
        cs = jnp.sum(y, axis=0, keepdims=True)            # (1, WCo)
        css = jnp.sum(y * y, axis=0, keepdims=True)       # (1, WCo)
        mean_w = jnp.dot(cs, q_mat, preferred_element_type=f32) * inv_n
        ex2_w = jnp.dot(css, q_mat, preferred_element_type=f32) * inv_n
        var_w = ex2_w - mean_w * mean_w
        a_w = g_w * jax.lax.rsqrt(var_w + EPS)
        return a_w, beta_w - mean_w * a_w

    def conv3x3(src_scr, w_ref, k):
        # Banded conv: 3 MXU matmuls (one per dy), bf16 operands, f32 accumulation.
        acc = jnp.zeros((NH, WCo), f32)
        for dy in range(3):
            a_dy = src_scr[:, 7 + dy:7 + dy + H, :].reshape(NH, k)
            acc = acc + jnp.dot(a_dy.astype(jnp.bfloat16), w_ref[dy],
                                preferred_element_type=f32)
        return acc

    x3 = x_ref[...]  # (N, H, W*Cin) f32, unpadded (used directly by the shortcut)

    # Stage x into the H-halo scratch.  Interior starts at sublane offset 8
    # (aligned, unmasked store); only the two 1-row halos are zeroed.
    xpad_scr[:, 7:8, :] = jnp.zeros((N, 1, WCi), f32)
    xpad_scr[:, 8 + H:9 + H, :] = jnp.zeros((N, 1, WCi), f32)
    xpad_scr[:, 8:8 + H, :] = x3

    # conv1 -> bn1 -> relu    (all activations below are lane-dense (N*H, W*Cout))
    h1 = conv3x3(xpad_scr, b1_ref, WCi)
    a1, c1 = bn_fold(h1, g1_ref[...], be1_ref[...])
    h1 = jnp.maximum(h1 * a1 + c1, 0.0)

    # conv2 -> bn2
    hpad_scr[:, 7:8, :] = jnp.zeros((N, 1, WCo), f32)
    hpad_scr[:, 8 + H:9 + H, :] = jnp.zeros((N, 1, WCo), f32)
    hpad_scr[:, 8:8 + H, :] = h1.reshape(N, H, WCo)
    h2 = conv3x3(hpad_scr, b2_ref, WCo)
    a2, c2 = bn_fold(h2, g2_ref[...], be2_ref[...])

    # projection shortcut: 1x1 conv as one block-diagonal matmul -> bn
    sc = jnp.dot(x3.reshape(NH, WCi).astype(jnp.bfloat16), s_ref[...],
                 preferred_element_type=f32)
    a3, c3 = bn_fold(sc, gs_ref[...], bes_ref[...])

    # bn2(conv2) + bn_s(shortcut), final relu, one lane-dense (32, 128) store.
    out_ref[...] = jnp.maximum((h2 * a2 + c2) + (sc * a3 + c3), 0.0)


# ---------------------------------------------------------------------------
# Wrapper
# ---------------------------------------------------------------------------
def residual_block_pallas(x_nchw, params):
    N, Cin, H, W = map(int, x_nchw.shape)
    Cout = int(params["w1"].shape[0])
    WCi, WCo = W * Cin, W * Cout

    # NCHW -> (N, H, W*Cin): channels fastest within a row -> lane-dense rows.
    x3 = jnp.transpose(x_nchw, (0, 2, 3, 1)).reshape(N, H, WCi).astype(jnp.float32)

    # One-time host-side weight re-layout; conv weights pre-cast to bf16 for the MXU.
    b1 = jnp.asarray(_conv3x3_to_band(params["w1"], W), dtype=jnp.bfloat16)  # (3,WCi,WCo)
    b2 = jnp.asarray(_conv3x3_to_band(params["w2"], W), dtype=jnp.bfloat16)  # (3,WCo,WCo)
    s = jnp.asarray(_conv1x1_to_block(params["ws"], W), dtype=jnp.bfloat16)  # (WCi,WCo)
    # Q[wi*C+ci, wo*C+co] = (ci == co): per-channel sum + broadcast back, via one matmul.
    q = jnp.asarray(np.kron(np.ones((W, W), np.float32), np.eye(Cout, dtype=np.float32)))

    def wide(v):  # per-channel (Cout,) -> (1, W*Cout) in the [w major, c minor] layout
        return jnp.tile(jnp.asarray(v, jnp.float32).reshape(1, Cout), (1, W))

    g1w, b1w = wide(params["g1"]), wide(params["b1"])
    g2w, b2w = wide(params["g2"]), wide(params["b2"])
    gsw, bsw = wide(params["gs"]), wide(params["bs"])

    kernel = functools.partial(_resblock_kernel, N=N, H=H, W=W, Cin=Cin, Cout=Cout)

    out2d = pl.pallas_call(
        kernel,
        out_shape=jax.ShapeDtypeStruct((N * H, WCo), jnp.float32),
        in_specs=[pl.BlockSpec(memory_space=pltpu.MemorySpace.VMEM)] * 11,
        out_specs=pl.BlockSpec(memory_space=pltpu.MemorySpace.VMEM),
        scratch_shapes=[
            pltpu.VMEM((N, H + 9, WCi), jnp.float32),  # H-halo staging for conv1 input
            pltpu.VMEM((N, H + 9, WCo), jnp.float32),  # H-halo staging for conv2 input
        ],
        compiler_params=pltpu.CompilerParams(vmem_limit_bytes=32 * 1024 * 1024),
    )(x3, b1, b2, s, q, g1w, b1w, g2w, b2w, gsw, bsw)

    # (N*H, W*Cout) -> NCHW (wrapper/XLA side).
    return out2d.reshape(N, H, W, Cout).transpose(0, 3, 1, 2)


# ---------------------------------------------------------------------------
# Pure-JAX reference with matching bf16-operand / f32-accumulate conv semantics.
# ---------------------------------------------------------------------------
def _ref_bn(y, g, b):
    mean = jnp.mean(y, axis=(0, 1, 2), keepdims=True)
    var = jnp.mean((y - mean) ** 2, axis=(0, 1, 2), keepdims=True)
    return (y - mean) * jax.lax.rsqrt(var + EPS) * g.reshape(1, 1, 1, -1) + b.reshape(1, 1, 1, -1)


def _ref_conv(x_nhwc, w_oihw, pad):
    # Round operands to bf16 (as the kernel's MXU path does), accumulate exactly in f32.
    xb = x_nhwc.astype(jnp.bfloat16).astype(jnp.float32)
    wb = jnp.transpose(w_oihw, (2, 3, 1, 0)).astype(jnp.bfloat16).astype(jnp.float32)
    return jax.lax.conv_general_dilated(
        xb, wb, (1, 1), ((pad, pad), (pad, pad)),
        dimension_numbers=("NHWC", "HWIO", "NHWC"),
        precision=jax.lax.Precision.HIGHEST)


def residual_block_ref(x_nchw, p):
    x = jnp.transpose(x_nchw, (0, 2, 3, 1)).astype(jnp.float32)
    h = jnp.maximum(_ref_bn(_ref_conv(x, p["w1"], 1), p["g1"], p["b1"]), 0.0)
    h = _ref_bn(_ref_conv(h, p["w2"], 1), p["g2"], p["b2"])
    sc = _ref_bn(_ref_conv(x, p["ws"], 0), p["gs"], p["bs"])
    return jnp.transpose(jnp.maximum(h + sc, 0.0), (0, 3, 1, 2))


if __name__ == "__main__":
    key = jax.random.PRNGKey(0)
    N, Cin, H, W = 2, 4, 16, 16
    Cout = 8  # in_channels != out_channels -> 1x1-conv + BN projection shortcut is used

    keys = jax.random.split(key, 8)
    x = jax.random.normal(keys[0], (N, Cin, H, W), jnp.float32)
    params = {
        "w1": 0.1 * jax.random.normal(keys[1], (Cout, Cin, 3, 3), jnp.float32),
        "w2": 0.1 * jax.random.normal(keys[2], (Cout, Cout, 3, 3), jnp.float32),
        "ws": 0.1 * jax.random.normal(keys[3], (Cout, Cin, 1, 1), jnp.float32),
        "g1": 1.0 + 0.1 * jax.random.normal(keys[4], (Cout,), jnp.float32),
        "b1": 0.05 * jax.random.normal(keys[5], (Cout,), jnp.float32),
        "g2": 1.0 + 0.1 * jax.random.normal(keys[6], (Cout,), jnp.float32),
        "b2": 0.05 * jax.random.normal(keys[7], (Cout,), jnp.float32),
        "gs": jnp.ones((Cout,), jnp.float32),
        "bs": jnp.zeros((Cout,), jnp.float32),
    }

    out = jax.block_until_ready(residual_block_pallas(x, params))
    ref = jax.block_until_ready(residual_block_ref(x, params))

    assert out.shape == (N, Cout, H, W)
    # bf16 MXU operands / f32 accumulation in both kernel and reference; tolerance
    # covers accumulation-order and single-pass-variance differences only.
    assert bool(jnp.allclose(out, ref, atol=1e-2, rtol=1e-2)), "mismatch vs reference"
    print("KERNEL_OK")
</pallas_src>

<mosaic_0001>
module attributes {stable_mosaic.version = 11 : i64} {
  func.func @_resblock_kernel(%arg0: memref<2x16x64xf32, #tpu.memory_space<vmem>>, %arg1: memref<3x64x128xbf16, #tpu.memory_space<vmem>>, %arg2: memref<3x128x128xbf16, #tpu.memory_space<vmem>>, %arg3: memref<64x128xbf16, #tpu.memory_space<vmem>>, %arg4: memref<128x128xf32, #tpu.memory_space<vmem>>, %arg5: memref<1x128xf32, #tpu.memory_space<vmem>>, %arg6: memref<1x128xf32, #tpu.memory_space<vmem>>, %arg7: memref<1x128xf32, #tpu.memory_space<vmem>>, %arg8: memref<1x128xf32, #tpu.memory_space<vmem>>, %arg9: memref<1x128xf32, #tpu.memory_space<vmem>>, %arg10: memref<1x128xf32, #tpu.memory_space<vmem>>, %arg11: memref<32x128xf32, #tpu.memory_space<vmem>>, %arg12: memref<2x25x64xf32, #tpu.memory_space<vmem>>, %arg13: memref<2x25x128xf32, #tpu.memory_space<vmem>>) attributes {dimension_semantics = [], scalar_prefetch = 0 : i64, scratch_operands = 2 : i64, tpu.core_type = #tpu.core_type<tc>} {
    %c0 = arith.constant 0 : index
    %c0_0 = arith.constant 0 : index
    %0 = vector.load %arg4[%c0, %c0_0] : memref<128x128xf32, #tpu.memory_space<vmem>>, vector<128x128xf32>
    %c0_1 = arith.constant 0 : index
    %c0_2 = arith.constant 0 : index
    %c0_3 = arith.constant 0 : index
    %1 = vector.load %arg0[%c0_1, %c0_2, %c0_3] : memref<2x16x64xf32, #tpu.memory_space<vmem>>, vector<2x16x64xf32>
    %cst = arith.constant 0.000000e+00 : f32
    %2 = vector.broadcast %cst : f32 to vector<2x1x64xf32>
    %c0_4 = arith.constant 0 : index
    %c7 = arith.constant 7 : index
    %c0_5 = arith.constant 0 : index
    %3 = vector.load %arg12[%c0_4, %c7, %c0_5] : memref<2x25x64xf32, #tpu.memory_space<vmem>>, vector<2x1x64xf32>
    tpu.vector_store %arg12[%c0_4, %c7, %c0_5], %2 {strides = array<i32>} : memref<2x25x64xf32, #tpu.memory_space<vmem>>, vector<2x1x64xf32>,
    %cst_6 = arith.constant 0.000000e+00 : f32
    %4 = vector.broadcast %cst_6 : f32 to vector<2x1x64xf32>
    %c0_7 = arith.constant 0 : index
    %c24 = arith.constant 24 : index
    %c0_8 = arith.constant 0 : index
    %5 = vector.load %arg12[%c0_7, %c24, %c0_8] : memref<2x25x64xf32, #tpu.memory_space<vmem>>, vector<2x1x64xf32>
    tpu.vector_store %arg12[%c0_7, %c24, %c0_8], %4 {strides = array<i32>} : memref<2x25x64xf32, #tpu.memory_space<vmem>>, vector<2x1x64xf32>,
    %c0_9 = arith.constant 0 : index
    %c8 = arith.constant 8 : index
    %c0_10 = arith.constant 0 : index
    %6 = vector.load %arg12[%c0_9, %c8, %c0_10] : memref<2x25x64xf32, #tpu.memory_space<vmem>>, vector<2x16x64xf32>
    tpu.vector_store %arg12[%c0_9, %c8, %c0_10], %1 {strides = array<i32>} : memref<2x25x64xf32, #tpu.memory_space<vmem>>, vector<2x16x64xf32>,
    %cst_11 = arith.constant 0.000000e+00 : f32
    %7 = vector.broadcast %cst_11 : f32 to vector<32x128xf32>
    %c0_12 = arith.constant 0 : index
    %c7_13 = arith.constant 7 : index
    %c0_14 = arith.constant 0 : index
    %8 = vector.load %arg12[%c0_12, %c7_13, %c0_14] : memref<2x25x64xf32, #tpu.memory_space<vmem>>, vector<2x16x64xf32>
    %9 = vector.shape_cast %8 : vector<2x16x64xf32> to vector<32x64xf32>
    %10 = arith.truncf %9 : vector<32x64xf32> to vector<32x64xbf16>
    %c0_15 = arith.constant 0 : index
    %c0_16 = arith.constant 0 : index
    %c0_17 = arith.constant 0 : index
    %11 = vector.load %arg1[%c0_15, %c0_16, %c0_17] : memref<3x64x128xbf16, #tpu.memory_space<vmem>>, vector<1x64x128xbf16>
    %12 = vector.shape_cast %11 : vector<1x64x128xbf16> to vector<64x128xbf16>
    %cst_18 = arith.constant dense<0.000000e+00> : vector<32x128xf32>
    %13 = tpu.matmul %10, %12, %cst_18 {dimension_numbers = #tpu.dot_dimension_numbers<[1], [0], [0], [1], [0, 0, 1, 1], [], []>} : vector<32x64xbf16>, vector<64x128xbf16>, vector<32x128xf32> -> vector<32x128xf32>
    %14 = arith.addf %7, %13 : vector<32x128xf32>
    %c0_19 = arith.constant 0 : index
    %c8_20 = arith.constant 8 : index
    %c0_21 = arith.constant 0 : index
    %15 = vector.load %arg12[%c0_19, %c8_20, %c0_21] : memref<2x25x64xf32, #tpu.memory_space<vmem>>, vector<2x16x64xf32>
    %16 = vector.shape_cast %15 : vector<2x16x64xf32> to vector<32x64xf32>
    %17 = arith.truncf %16 : vector<32x64xf32> to vector<32x64xbf16>
    %c1 = arith.constant 1 : index
    %c0_22 = arith.constant 0 : index
    %c0_23 = arith.constant 0 : index
    %18 = vector.load %arg1[%c1, %c0_22, %c0_23] : memref<3x64x128xbf16, #tpu.memory_space<vmem>>, vector<1x64x128xbf16>
    %19 = vector.shape_cast %18 : vector<1x64x128xbf16> to vector<64x128xbf16>
    %cst_24 = arith.constant dense<0.000000e+00> : vector<32x128xf32>
    %20 = tpu.matmul %17, %19, %cst_24 {dimension_numbers = #tpu.dot_dimension_numbers<[1], [0], [0], [1], [0, 0, 1, 1], [], []>} : vector<32x64xbf16>, vector<64x128xbf16>, vector<32x128xf32> -> vector<32x128xf32>
    %21 = arith.addf %14, %20 : vector<32x128xf32>
    %c0_25 = arith.constant 0 : index
    %c9 = arith.constant 9 : index
    %c0_26 = arith.constant 0 : index
    %22 = vector.load %arg12[%c0_25, %c9, %c0_26] : memref<2x25x64xf32, #tpu.memory_space<vmem>>, vector<2x16x64xf32>
    %23 = vector.shape_cast %22 : vector<2x16x64xf32> to vector<32x64xf32>
    %24 = arith.truncf %23 : vector<32x64xf32> to vector<32x64xbf16>
    %c2 = arith.constant 2 : index
    %c0_27 = arith.constant 0 : index
    %c0_28 = arith.constant 0 : index
    %25 = vector.load %arg1[%c2, %c0_27, %c0_28] : memref<3x64x128xbf16, #tpu.memory_space<vmem>>, vector<1x64x128xbf16>
    %26 = vector.shape_cast %25 : vector<1x64x128xbf16> to vector<64x128xbf16>
    %cst_29 = arith.constant dense<0.000000e+00> : vector<32x128xf32>
    %27 = tpu.matmul %24, %26, %cst_29 {dimension_numbers = #tpu.dot_dimension_numbers<[1], [0], [0], [1], [0, 0, 1, 1], [], []>} : vector<32x64xbf16>, vector<64x128xbf16>, vector<32x128xf32> -> vector<32x128xf32>
    %28 = arith.addf %21, %27 : vector<32x128xf32>
    %c0_30 = arith.constant 0 : index
    %c0_31 = arith.constant 0 : index
    %29 = vector.load %arg5[%c0_30, %c0_31] : memref<1x128xf32, #tpu.memory_space<vmem>>, vector<1x128xf32>
    %c0_32 = arith.constant 0 : index
    %c0_33 = arith.constant 0 : index
    %30 = vector.load %arg6[%c0_32, %c0_33] : memref<1x128xf32, #tpu.memory_space<vmem>>, vector<1x128xf32>
    %cst_34 = arith.constant dense<0.000000e+00> : vector<128xf32>
    %31 = vector.multi_reduction <add>, %28, %cst_34 [0] : vector<32x128xf32> to vector<128xf32>
    %32 = vector.shape_cast %31 : vector<128xf32> to vector<1x128xf32>
    %33 = arith.mulf %28, %28 : vector<32x128xf32>
    %cst_35 = arith.constant dense<0.000000e+00> : vector<128xf32>
    %34 = vector.multi_reduction <add>, %33, %cst_35 [0] : vector<32x128xf32> to vector<128xf32>
    %35 = vector.shape_cast %34 : vector<128xf32> to vector<1x128xf32>
    %cst_36 = arith.constant dense<0.000000e+00> : vector<1x128xf32>
    %36 = tpu.matmul %32, %0, %cst_36 {dimension_numbers = #tpu.dot_dimension_numbers<[1], [0], [0], [1], [0, 0, 1, 1], [], []>} : vector<1x128xf32>, vector<128x128xf32>, vector<1x128xf32> -> vector<1x128xf32>
    %cst_37 = arith.constant 0.001953125 : f32
    %37 = vector.broadcast %cst_37 : f32 to vector<1x128xf32>
    %38 = arith.mulf %36, %37 : vector<1x128xf32>
    %cst_38 = arith.constant dense<0.000000e+00> : vector<1x128xf32>
    %39 = tpu.matmul %35, %0, %cst_38 {dimension_numbers = #tpu.dot_dimension_numbers<[1], [0], [0], [1], [0, 0, 1, 1], [], []>} : vector<1x128xf32>, vector<128x128xf32>, vector<1x128xf32> -> vector<1x128xf32>
    %cst_39 = arith.constant 0.001953125 : f32
    %40 = vector.broadcast %cst_39 : f32 to vector<1x128xf32>
    %41 = arith.mulf %39, %40 : vector<1x128xf32>
    %42 = arith.mulf %38, %38 : vector<1x128xf32>
    %43 = arith.subf %41, %42 : vector<1x128xf32>
    %cst_40 = arith.constant 9.99999974E-6 : f32
    %44 = vector.broadcast %cst_40 : f32 to vector<1x128xf32>
    %45 = arith.addf %43, %44 : vector<1x128xf32>
    %46 = math.rsqrt %45 : vector<1x128xf32>
    %47 = arith.mulf %29, %46 : vector<1x128xf32>
    %48 = arith.mulf %38, %47 : vector<1x128xf32>
    %49 = arith.subf %30, %48 : vector<1x128xf32>
    %50 = vector.broadcast %47 : vector<1x128xf32> to vector<32x128xf32>
    %51 = arith.mulf %28, %50 : vector<32x128xf32>
    %52 = vector.broadcast %49 : vector<1x128xf32> to vector<32x128xf32>
    %53 = arith.addf %51, %52 : vector<32x128xf32>
    %cst_41 = arith.constant 0.000000e+00 : f32
    %54 = vector.broadcast %cst_41 : f32 to vector<32x128xf32>
    %55 = arith.maximumf %53, %54 : vector<32x128xf32>
    %cst_42 = arith.constant 0.000000e+00 : f32
    %56 = vector.broadcast %cst_42 : f32 to vector<2x1x128xf32>
    %c0_43 = arith.constant 0 : index
    %c7_44 = arith.constant 7 : index
    %c0_45 = arith.constant 0 : index
    %57 = vector.load %arg13[%c0_43, %c7_44, %c0_45] : memref<2x25x128xf32, #tpu.memory_space<vmem>>, vector<2x1x128xf32>
    tpu.vector_store %arg13[%c0_43, %c7_44, %c0_45], %56 {strides = array<i32>} : memref<2x25x128xf32, #tpu.memory_space<vmem>>, vector<2x1x128xf32>,
    %cst_46 = arith.constant 0.000000e+00 : f32
    %58 = vector.broadcast %cst_46 : f32 to vector<2x1x128xf32>
    %c0_47 = arith.constant 0 : index
    %c24_48 = arith.constant 24 : index
    %c0_49 = arith.constant 0 : index
    %59 = vector.load %arg13[%c0_47, %c24_48, %c0_49] : memref<2x25x128xf32, #tpu.memory_space<vmem>>, vector<2x1x128xf32>
    tpu.vector_store %arg13[%c0_47, %c24_48, %c0_49], %58 {strides = array<i32>} : memref<2x25x128xf32, #tpu.memory_space<vmem>>, vector<2x1x128xf32>,
    %60 = vector.shape_cast %55 : vector<32x128xf32> to vector<2x16x128xf32>
    %c0_50 = arith.constant 0 : index
    %c8_51 = arith.constant 8 : index
    %c0_52 = arith.constant 0 : index
    %61 = vector.load %arg13[%c0_50, %c8_51, %c0_52] : memref<2x25x128xf32, #tpu.memory_space<vmem>>, vector<2x16x128xf32>
    tpu.vector_store %arg13[%c0_50, %c8_51, %c0_52], %60 {strides = array<i32>} : memref<2x25x128xf32, #tpu.memory_space<vmem>>, vector<2x16x128xf32>,
    %cst_53 = arith.constant 0.000000e+00 : f32
    %62 = vector.broadcast %cst_53 : f32 to vector<32x128xf32>
    %c0_54 = arith.constant 0 : index
    %c7_55 = arith.constant 7 : index
    %c0_56 = arith.constant 0 : index
    %63 = vector.load %arg13[%c0_54, %c7_55, %c0_56] : memref<2x25x128xf32, #tpu.memory_space<vmem>>, vector<2x16x128xf32>
    %64 = vector.shape_cast %63 : vector<2x16x128xf32> to vector<32x128xf32>
    %65 = arith.truncf %64 : vector<32x128xf32> to vector<32x128xbf16>
    %c0_57 = arith.constant 0 : index
    %c0_58 = arith.constant 0 : index
    %c0_59 = arith.constant 0 : index
    %66 = vector.load %arg2[%c0_57, %c0_58, %c0_59] : memref<3x128x128xbf16, #tpu.memory_space<vmem>>, vector<1x128x128xbf16>
    %67 = vector.shape_cast %66 : vector<1x128x128xbf16> to vector<128x128xbf16>
    %cst_60 = arith.constant dense<0.000000e+00> : vector<32x128xf32>
    %68 = tpu.matmul %65, %67, %cst_60 {dimension_numbers = #tpu.dot_dimension_numbers<[1], [0], [0], [1], [0, 0, 1, 1], [], []>} : vector<32x128xbf16>, vector<128x128xbf16>, vector<32x128xf32> -> vector<32x128xf32>
    %69 = arith.addf %62, %68 : vector<32x128xf32>
    %c0_61 = arith.constant 0 : index
    %c8_62 = arith.constant 8 : index
    %c0_63 = arith.constant 0 : index
    %70 = vector.load %arg13[%c0_61, %c8_62, %c0_63] : memref<2x25x128xf32, #tpu.memory_space<vmem>>, vector<2x16x128xf32>
    %71 = vector.shape_cast %70 : vector<2x16x128xf32> to vector<32x128xf32>
    %72 = arith.truncf %71 : vector<32x128xf32> to vector<32x128xbf16>
    %c1_64 = arith.constant 1 : index
    %c0_65 = arith.constant 0 : index
    %c0_66 = arith.constant 0 : index
    %73 = vector.load %arg2[%c1_64, %c0_65, %c0_66] : memref<3x128x128xbf16, #tpu.memory_space<vmem>>, vector<1x128x128xbf16>
    %74 = vector.shape_cast %73 : vector<1x128x128xbf16> to vector<128x128xbf16>
    %cst_67 = arith.constant dense<0.000000e+00> : vector<32x128xf32>
    %75 = tpu.matmul %72, %74, %cst_67 {dimension_numbers = #tpu.dot_dimension_numbers<[1], [0], [0], [1], [0, 0, 1, 1], [], []>} : vector<32x128xbf16>, vector<128x128xbf16>, vector<32x128xf32> -> vector<32x128xf32>
    %76 = arith.addf %69, %75 : vector<32x128xf32>
    %c0_68 = arith.constant 0 : index
    %c9_69 = arith.constant 9 : index
    %c0_70 = arith.constant 0 : index
    %77 = vector.load %arg13[%c0_68, %c9_69, %c0_70] : memref<2x25x128xf32, #tpu.memory_space<vmem>>, vector<2x16x128xf32>
    %78 = vector.shape_cast %77 : vector<2x16x128xf32> to vector<32x128xf32>
    %79 = arith.truncf %78 : vector<32x128xf32> to vector<32x128xbf16>
    %c2_71 = arith.constant 2 : index
    %c0_72 = arith.constant 0 : index
    %c0_73 = arith.constant 0 : index
    %80 = vector.load %arg2[%c2_71, %c0_72, %c0_73] : memref<3x128x128xbf16, #tpu.memory_space<vmem>>, vector<1x128x128xbf16>
    %81 = vector.shape_cast %80 : vector<1x128x128xbf16> to vector<128x128xbf16>
    %cst_74 = arith.constant dense<0.000000e+00> : vector<32x128xf32>
    %82 = tpu.matmul %79, %81, %cst_74 {dimension_numbers = #tpu.dot_dimension_numbers<[1], [0], [0], [1], [0, 0, 1, 1], [], []>} : vector<32x128xbf16>, vector<128x128xbf16>, vector<32x128xf32> -> vector<32x128xf32>
    %83 = arith.addf %76, %82 : vector<32x128xf32>
    %c0_75 = arith.constant 0 : index
    %c0_76 = arith.constant 0 : index
    %84 = vector.load %arg7[%c0_75, %c0_76] : memref<1x128xf32, #tpu.memory_space<vmem>>, vector<1x128xf32>
    %c0_77 = arith.constant 0 : index
    %c0_78 = arith.constant 0 : index
    %85 = vector.load %arg8[%c0_77, %c0_78] : memref<1x128xf32, #tpu.memory_space<vmem>>, vector<1x128xf32>
    %cst_79 = arith.constant dense<0.000000e+00> : vector<128xf32>
    %86 = vector.multi_reduction <add>, %83, %cst_79 [0] : vector<32x128xf32> to vector<128xf32>
    %87 = vector.shape_cast %86 : vector<128xf32> to vector<1x128xf32>
    %88 = arith.mulf %83, %83 : vector<32x128xf32>
    %cst_80 = arith.constant dense<0.000000e+00> : vector<128xf32>
    %89 = vector.multi_reduction <add>, %88, %cst_80 [0] : vector<32x128xf32> to vector<128xf32>
    %90 = vector.shape_cast %89 : vector<128xf32> to vector<1x128xf32>
    %cst_81 = arith.constant dense<0.000000e+00> : vector<1x128xf32>
    %91 = tpu.matmul %87, %0, %cst_81 {dimension_numbers = #tpu.dot_dimension_numbers<[1], [0], [0], [1], [0, 0, 1, 1], [], []>} : vector<1x128xf32>, vector<128x128xf32>, vector<1x128xf32> -> vector<1x128xf32>
    %cst_82 = arith.constant 0.001953125 : f32
    %92 = vector.broadcast %cst_82 : f32 to vector<1x128xf32>
    %93 = arith.mulf %91, %92 : vector<1x128xf32>
    %cst_83 = arith.constant dense<0.000000e+00> : vector<1x128xf32>
    %94 = tpu.matmul %90, %0, %cst_83 {dimension_numbers = #tpu.dot_dimension_numbers<[1], [0], [0], [1], [0, 0, 1, 1], [], []>} : vector<1x128xf32>, vector<128x128xf32>, vector<1x128xf32> -> vector<1x128xf32>
    %cst_84 = arith.constant 0.001953125 : f32
    %95 = vector.broadcast %cst_84 : f32 to vector<1x128xf32>
    %96 = arith.mulf %94, %95 : vector<1x128xf32>
    %97 = arith.mulf %93, %93 : vector<1x128xf32>
    %98 = arith.subf %96, %97 : vector<1x128xf32>
    %cst_85 = arith.constant 9.99999974E-6 : f32
    %99 = vector.broadcast %cst_85 : f32 to vector<1x128xf32>
    %100 = arith.addf %98, %99 : vector<1x128xf32>
    %101 = math.rsqrt %100 : vector<1x128xf32>
    %102 = arith.mulf %84, %101 : vector<1x128xf32>
    %103 = arith.mulf %93, %102 : vector<1x128xf32>
    %104 = arith.subf %85, %103 : vector<1x128xf32>
    %105 = vector.shape_cast %1 : vector<2x16x64xf32> to vector<32x64xf32>
    %106 = arith.truncf %105 : vector<32x64xf32> to vector<32x64xbf16>
    %c0_86 = arith.constant 0 : index
    %c0_87 = arith.constant 0 : index
    %107 = vector.load %arg3[%c0_86, %c0_87] : memref<64x128xbf16, #tpu.memory_space<vmem>>, vector<64x128xbf16>
    %cst_88 = arith.constant dense<0.000000e+00> : vector<32x128xf32>
    %108 = tpu.matmul %106, %107, %cst_88 {dimension_numbers = #tpu.dot_dimension_numbers<[1], [0], [0], [1], [0, 0, 1, 1], [], []>} : vector<32x64xbf16>, vector<64x128xbf16>, vector<32x128xf32> -> vector<32x128xf32>
    %c0_89 = arith.constant 0 : index
    %c0_90 = arith.constant 0 : index
    %109 = vector.load %arg9[%c0_89, %c0_90] : memref<1x128xf32, #tpu.memory_space<vmem>>, vector<1x128xf32>
    %c0_91 = arith.constant 0 : index
    %c0_92 = arith.constant 0 : index
    %110 = vector.load %arg10[%c0_91, %c0_92] : memref<1x128xf32, #tpu.memory_space<vmem>>, vector<1x128xf32>
    %cst_93 = arith.constant dense<0.000000e+00> : vector<128xf32>
    %111 = vector.multi_reduction <add>, %108, %cst_93 [0] : vector<32x128xf32> to vector<128xf32>
    %112 = vector.shape_cast %111 : vector<128xf32> to vector<1x128xf32>
    %113 = arith.mulf %108, %108 : vector<32x128xf32>
    %cst_94 = arith.constant dense<0.000000e+00> : vector<128xf32>
    %114 = vector.multi_reduction <add>, %113, %cst_94 [0] : vector<32x128xf32> to vector<128xf32>
    %115 = vector.shape_cast %114 : vector<128xf32> to vector<1x128xf32>
    %cst_95 = arith.constant dense<0.000000e+00> : vector<1x128xf32>
    %116 = tpu.matmul %112, %0, %cst_95 {dimension_numbers = #tpu.dot_dimension_numbers<[1], [0], [0], [1], [0, 0, 1, 1], [], []>} : vector<1x128xf32>, vector<128x128xf32>, vector<1x128xf32> -> vector<1x128xf32>
    %cst_96 = arith.constant 0.001953125 : f32
    %117 = vector.broadcast %cst_96 : f32 to vector<1x128xf32>
    %118 = arith.mulf %116, %117 : vector<1x128xf32>
    %cst_97 = arith.constant dense<0.000000e+00> : vector<1x128xf32>
    %119 = tpu.matmul %115, %0, %cst_97 {dimension_numbers = #tpu.dot_dimension_numbers<[1], [0], [0], [1], [0, 0, 1, 1], [], []>} : vector<1x128xf32>, vector<128x128xf32>, vector<1x128xf32> -> vector<1x128xf32>
    %cst_98 = arith.constant 0.001953125 : f32
    %120 = vector.broadcast %cst_98 : f32 to vector<1x128xf32>
    %121 = arith.mulf %119, %120 : vector<1x128xf32>
    %122 = arith.mulf %118, %118 : vector<1x128xf32>
    %123 = arith.subf %121, %122 : vector<1x128xf32>
    %cst_99 = arith.constant 9.99999974E-6 : f32
    %124 = vector.broadcast %cst_99 : f32 to vector<1x128xf32>
    %125 = arith.addf %123, %124 : vector<1x128xf32>
    %126 = math.rsqrt %125 : vector<1x128xf32>
    %127 = arith.mulf %109, %126 : vector<1x128xf32>
    %128 = arith.mulf %118, %127 : vector<1x128xf32>
    %129 = arith.subf %110, %128 : vector<1x128xf32>
    %130 = vector.broadcast %102 : vector<1x128xf32> to vector<32x128xf32>
    %131 = arith.mulf %83, %130 : vector<32x128xf32>
    %132 = vector.broadcast %104 : vector<1x128xf32> to vector<32x128xf32>
    %133 = arith.addf %131, %132 : vector<32x128xf32>
    %134 = vector.broadcast %127 : vector<1x128xf32> to vector<32x128xf32>
    %135 = arith.mulf %108, %134 : vector<32x128xf32>
    %136 = vector.broadcast %129 : vector<1x128xf32> to vector<32x128xf32>
    %137 = arith.addf %135, %136 : vector<32x128xf32>
    %138 = arith.addf %133, %137 : vector<32x128xf32>
    %cst_100 = arith.constant 0.000000e+00 : f32
    %139 = vector.broadcast %cst_100 : f32 to vector<32x128xf32>
    %140 = arith.maximumf %138, %139 : vector<32x128xf32>
    %c0_101 = arith.constant 0 : index
    %c0_102 = arith.constant 0 : index
    %141 = vector.load %arg11[%c0_101, %c0_102] : memref<32x128xf32, #tpu.memory_space<vmem>>, vector<32x128xf32>
    tpu.vector_store %arg11[%c0_101, %c0_102], %140 {strides = array<i32>} : memref<32x128xf32, #tpu.memory_space<vmem>>, vector<32x128xf32>,
    return
  }
}

</mosaic_0001>

<bundles_post_ra>
// kernel: tpu_custom_call.1
= control target key start
LH: loop header
LB: loop body
LE: loop exit
PB: predicated region body
PF: predicated region fallthrough
CT: control target
= control target key end

     0   :  { %16 = vsyncpa [#allocation5], 0  ;;  %s2775_s0 = inlined_call_operand.hbm [shape: f32[2,16,64], index: 0, kind: input, shape index: {}]   ;;  %s2776_s1 = inlined_call_operand.hbm [shape: bf16[3,64,128], index: 1, kind: input, shape index: {}]   ;;  %s2777_s2 = inlined_call_operand.hbm [shape: bf16[3,128,128], index: 2, kind: input, shape index: {}]   ;;  %s2778_s3 = inlined_call_operand.hbm [shape: bf16[64,128], index: 3, kind: input, shape index: {}]   ;;  %s2779_s4 = inlined_call_operand.hbm [shape: f32[128,128], index: 4, kind: input, shape index: {}]   ;;  %s2780_s5 = inlined_call_operand.vmem [shape: f32[1,128], index: 5, kind: input, shape index: {}]   ;;  %s2781_s6 = inlined_call_operand.vmem [shape: f32[1,128], index: 6, kind: input, shape index: {}]   ;;  %s2782_s7 = inlined_call_operand.vmem [shape: f32[1,128], index: 7, kind: input, shape index: {}]   ;;  %s2783_s8 = inlined_call_operand.vmem [shape: f32[1,128], index: 8, kind: input, shape index: {}]   ;;  %s2784_s9 = inlined_call_operand.vmem [shape: f32[1,128], index: 9, kind: input, shape index: {}]   ;;  %s2785_s10 = inlined_call_operand.vmem [shape: f32[1,128], index: 10, kind: input, shape index: {}]   ;;  %s2786_s11 = inlined_call_operand.hbm [shape: f32[32,128], index: 11, kind: output, shape index: {}]  }
   0x1   :  { %17 = vsyncpa [#allocation8], 0 }
   0x2   :  { %18 = vsyncpa [#allocation11], 0 }
   0x3   :  { %19 = vsyncpa [#allocation6], 0  ;;  %s2378_s17 = smov [#allocation7]   ;;  %s2238_s21 = scalar_lea.hbm %s2776_s1, 1536 }
   0x4   :  { %s37_s18 = sshll.u32 %s2378_s17, 4  ;;  %p2239_p0 = scmp.ne.s32.totalorder %s2776_s1, %s2238_s21  ;;  %s38_s18 = int_to_ptr.vmem [resolvable:$true] %s37_s18 }
   0x5   :  { %p2242_p1 = scmp.lt.u32.totalorder %s2238_s21, %s2776_s1 }
   0x7   :  { %p2244_p2 = pnand %p2242_p1, %p2239_p0 }
   0x9   :  { %2247 = shalt.err (!%p2244_p2)
}
   0xa   :  { %s2248_s26 = scalar_lea.vmem %s38_s18, 1536  ;;  %p2253_p4 = scmp.lt.s32.totalorder %s38_s18, %s38_s18 }
   0xb   :  { %p2249_p3 = scmp.ne.s32.totalorder %s38_s18, %s2248_s26  ;;  %p2254_p5 = scmp.lt.s32.totalorder %s2248_s26, %s2248_s26 }
   0xd   :  { %p2255_p6 = por %p2254_p5, %p2253_p4 }
   0xf   :  { %p2256_p7 = pnand %p2255_p6, %p2249_p3 }
  0x11   :  { %2259 = shalt.err (!%p2256_p7)
}
  0x12   :  { %s2379_s27 = smov 64   ;;  %s2380_s28 = smov 4  }
  0x13   :  { %43 = dma.hbm_to_vmem [thread:$0]  %s2776_s1, 1536, %s38_s18, [#allocation8], %s2379_s27, %s2379_s27, %s2380_s28  }
  0x14   :  { %s2381_s12 = smov [#allocation10]   ;;  %s2382_s14 = smov [#allocation4]  }
  0x15   :  { %s61_s13 = sshll.u32 %s2381_s12, 4  ;;  %s25_s15 = sshll.u32 %s2382_s14, 4  ;;  %s62_s13 = int_to_ptr.vmem [resolvable:$true] %s61_s13  ;;  %s26_s15 = int_to_ptr.vmem [resolvable:$true] %s25_s15 }
  0x16   :  { %s2260_s19 = scalar_lea.hbm %s2778_s3, 512 }
  0x17   :  { %p2261_p8 = scmp.ne.s32.totalorder %s2778_s3, %s2260_s19  ;;  %p2264_p9 = scmp.lt.u32.totalorder %s2260_s19, %s2778_s3 }
  0x19   :  { %p2266_p10 = pnand %p2264_p9, %p2261_p8 }
  0x1b   :  { %2269 = shalt.err (!%p2266_p10)
}
  0x1c   :  { %s2270_s1 = scalar_lea.vmem %s62_s13, 512  ;;  %p2275_p12 = scmp.lt.s32.totalorder %s62_s13, %s62_s13 }
  0x1d   :  { %p2271_p11 = scmp.ne.s32.totalorder %s62_s13, %s2270_s1  ;;  %p2276_p13 = scmp.lt.s32.totalorder %s2270_s1, %s2270_s1 }
  0x1f   :  { %p2277_p0 = por %p2276_p13, %p2275_p12 }
  0x21   :  { %p2278_p1 = pnand %p2277_p0, %p2271_p11 }
  0x23   :  { %2281 = shalt.err (!%p2278_p1)
}
  0x24   :  { %67 = dma.hbm_to_vmem [thread:$0]  %s2778_s3, 512, %s62_s13, [#allocation11], %s2379_s27, %s2379_s27, %s2380_s28  }
  0x25   :  { %s2282_s29 = scalar_lea.hbm %s2775_s0, 512 }
  0x26   :  { %p2283_p2 = scmp.ne.s32.totalorder %s2775_s0, %s2282_s29  ;;  %p2286_p3 = scmp.lt.u32.totalorder %s2282_s29, %s2775_s0 }
  0x28   :  { %p2288_p4 = pnand %p2286_p3, %p2283_p2 }
  0x2a   :  { %2291 = shalt.err (!%p2288_p4)
}
  0x2b   :  { %s2292_s17 = scalar_lea.vmem %s26_s15, 512  ;;  %p2297_p6 = scmp.lt.s32.totalorder %s26_s15, %s26_s15 }
  0x2c   :  { %p2293_p5 = scmp.ne.s32.totalorder %s26_s15, %s2292_s17  ;;  %p2298_p7 = scmp.lt.s32.totalorder %s2292_s17, %s2292_s17 }
  0x2e   :  { %p2299_p8 = por %p2298_p7, %p2297_p6 }
  0x30   :  { %p2300_p9 = pnand %p2299_p8, %p2293_p5 }
  0x32   :  { %2303 = shalt.err (!%p2300_p9)
}
  0x33   :  { %s2383_s3 = smov 128   ;;  %s2384_s13 = smov 8  }
  0x34   :  { %31 = dma.hbm_to_vmem [thread:$0]  %s2775_s0, 512, %s26_s15, [#allocation5], %s2383_s3, %s2383_s3, %s2384_s13  }
  0x35   :  { %s2385_s21 = smov [#allocation9]   ;;  %s2386_s23 = smov [#allocation12]  }
  0x36   :  { %s49_s22 = sshll.u32 %s2385_s21, 4  ;;  %s73_s1 = sshll.u32 %s2386_s23, 4  ;;  %s50_s22 = int_to_ptr.vmem [resolvable:$true] %s49_s22  ;;  %s74_s1 = int_to_ptr.vmem [resolvable:$true] %s73_s1 }
  0x37   :  { %s2304_s25 = scalar_lea.hbm %s2777_s2, 3072 }
  0x38   :  { %p2305_p10 = scmp.ne.s32.totalorder %s2777_s2, %s2304_s25  ;;  %p2308_p11 = scmp.lt.u32.totalorder %s2304_s25, %s2777_s2 }
  0x3a   :  { %p2310_p12 = pnand %p2308_p11, %p2305_p10 }
  0x3c   :  { %2313 = shalt.err (!%p2310_p12)
}
  0x3d   :  { %s2314_s0 = scalar_lea.vmem %s50_s22, 3072  ;;  %p2319_p0 = scmp.lt.s32.totalorder %s50_s22, %s50_s22 }
  0x3e   :  { %p2315_p13 = scmp.ne.s32.totalorder %s50_s22, %s2314_s0  ;;  %p2320_p1 = scmp.lt.s32.totalorder %s2314_s0, %s2314_s0 }
  0x40   :  { %p2321_p2 = por %p2320_p1, %p2319_p0 }
  0x42   :  { %p2322_p3 = pnand %p2321_p2, %p2315_p13 }
  0x44   :  { %2325 = shalt.err (!%p2322_p3)
}
  0x45   :  { %55 = dma.hbm_to_vmem [thread:$0]  %s2777_s2, 3072, %s50_s22, [#allocation8], %s2379_s27, %s2379_s27, %s2380_s28  }
  0x46   :  { %s2326_s19 = scalar_lea.hbm %s2779_s4, 2048 }
  0x47   :  { %p2327_p4 = scmp.ne.s32.totalorder %s2779_s4, %s2326_s19  ;;  %p2330_p5 = scmp.lt.u32.totalorder %s2326_s19, %s2779_s4 }
  0x49   :  { %p2332_p6 = pnand %p2330_p5, %p2327_p4 }
  0x4b   :  { %2335 = shalt.err (!%p2332_p6)
}
  0x4c   :  { %s2336_s24 = scalar_lea.vmem %s74_s1, 2048  ;;  %p2341_p8 = scmp.lt.s32.totalorder %s74_s1, %s74_s1 }
  0x4d   :  { %p2337_p7 = scmp.ne.s32.totalorder %s74_s1, %s2336_s24  ;;  %p2342_p9 = scmp.lt.s32.totalorder %s2336_s24, %s2336_s24 }
  0x4f   :  { %p2343_p10 = por %p2342_p9, %p2341_p8 }
  0x51   :  { %p2344_p11 = pnand %p2343_p10, %p2337_p7 }
  0x53   :  { %2347 = shalt.err (!%p2344_p11)
}
  0x54   :  { %79 = dma.hbm_to_vmem [thread:$0]  %s2779_s4, 2048, %s74_s1, [#allocation11], %s2383_s3, %s2383_s3, %s2384_s13  }
  0x55   :  { %2370 = dma.done.wait [#allocation5], 512  }
  0x56   :  { %2371 = vsyncadd [#allocation5], 4294966784 }
  0x57   :  { %2372 = dma.done.wait [#allocation8], 4608  }
  0x58   :  { %2373 = vsyncadd [#allocation8], 4294962688 }
  0x59   :  { %2374 = dma.done.wait [#allocation11], 2560  }
  0x5a   :  { %2375 = vsyncadd [#allocation11], 4294964736  ;;  %vm128_vm0 = vcmask 516096   ;;  %v2387_v0 = vmov 0.0   ;;  %v2388_v1 = vmov 0.0|0.0   ;;  %v2192_v2 = vld [vmem:[#allocation7 + $0x20] sm:$0xff]  }
  0x5b   :  { %129 = vst.msk [vmem:[#allocation2 + $0x7] sm:$0x1] %vm128_vm0, %v2387_v0  ;;  %130 = vst.msk [vmem:[#allocation2 + $0x27] sm:$0x1] %vm128_vm0, %v2387_v0  ;;  %2019 = vmatprep.subr.bf16.mxu1 %v2388_v1  ;;  %v2193_v3 = vld [vmem:[#allocation7 + $0x28] sm:$0xff]   ;;  %1701 = vmatprep.subr.bf16.mxu0 %v2192_v2  ;;  %vm133_vm1 = vcmask 523264  }
  0x5c   :  { %131 = vst.msk [vmem:[#allocation2 + $0x18] sm:$0x1] %vm128_vm0, %v2387_v0  ;;  %132 = vst.msk [vmem:[#allocation2 + $0x38] sm:$0x1] %vm128_vm0, %v2387_v0  ;;  %1702 = vmatpush3.bf16.msra.mxu0 %v2192_v2  ;;  %v2194_v4 = vld [vmem:[#allocation7 + $0x30] sm:$0xff]   ;;  %v2535_v5 = vld [vmem:[#allocation4] sm:$0xff] }
  0x5d   :  { %620 = vst [vmem:[#allocation3 + $0x7] sm:$0x1] %v2387_v0  ;;  %621 = vst [vmem:[#allocation3 + $0x27] sm:$0x1] %v2387_v0  ;;  %1703 = vmatprep.subr.bf16.mxu0 %v2193_v3  ;;  %v2537_v6 = vld [vmem:[#allocation4 + $0x8] sm:$0xff]  ;;  %v2543_v7 = vld [vmem:[#allocation4 + $0x10] sm:$0xff] }
  0x5e   :  { %622 = vst [vmem:[#allocation3 + $0x18] sm:$0x1] %v2387_v0  ;;  %623 = vst [vmem:[#allocation3 + $0x38] sm:$0x1] %v2387_v0  ;;  %v2545_v8 = vld [vmem:[#allocation4 + $0x18] sm:$0xff]  ;;  %v2196_v10 = vld [vmem:[#allocation7] sm:$0xff]  }
  0x5f   :  { %134 = vst.msk [vmem:[#allocation2 + $0x8] sm:$0xff] %vm133_vm1, %v2535_v5  ;;  %135 = vst.msk [vmem:[#allocation2 + $0x10] sm:$0xff] %vm133_vm1, %v2537_v6  ;;  %v2195_v9 = vld [vmem:[#allocation7 + $0x38] sm:$0xff]   ;;  %v2197_v20 = vld [vmem:[#allocation7 + $0x8] sm:$0xff]   ;;  %vm2389_vm2 = vmmov 0  }
  0x60   :  { %136 = vst.msk [vmem:[#allocation2 + $0x28] sm:$0xff] %vm133_vm1, %v2543_v7  ;;  %1704 = vmatpush3.bf16.msra.mxu0 %v2193_v3  ;;  %137 = vst.msk [vmem:[#allocation2 + $0x30] sm:$0xff] %vm133_vm1, %v2545_v8  ;;  %v108_v21 = vld [vmem:[#allocation12] sm:$0xff]  ;;  %v109_v22 = vld [vmem:[#allocation12 + $0x8] sm:$0xff]  ;;  %1769 = vmatprep.mubr.msk.f32.mxu1 %vm2389_vm2, %v2387_v0 }
  0x61   :  { %1705 = vmatprep.subr.bf16.mxu0 %v2194_v4  ;;  %v2198_v23 = vld [vmem:[#allocation7 + $0x10] sm:$0xff]   ;;  %v2553_v24 = vpack.c.bf16 %v109_v22, %v108_v21  ;;  %v111_v26 = vld [vmem:[#allocation12 + $0x18] sm:$0xff]  ;;  %v112_v27 = vld [vmem:[#allocation12 + $0x20] sm:$0xff] }
  0x62   :  { %v110_v25 = vld [vmem:[#allocation12 + $0x10] sm:$0xff]  ;;  %v113_v28 = vld [vmem:[#allocation12 + $0x28] sm:$0xff]  ;;  %v2199_v30 = vld [vmem:[#allocation7 + $0x18] sm:$0xff]  }
  0x63   :  { %2021 = vmatpush3.bf16.msra.mxu1 %v2553_v24  ;;  %v2557_v29 = vpack.c.bf16 %v111_v26, %v110_v25  ;;  %v2561_v31 = vpack.c.bf16 %v113_v28, %v112_v27  ;;  %v2200_v34 = vld [vmem:[#allocation7 + $0x40] sm:$0xff]   ;;  %v2201_v38 = vld [vmem:[#allocation7 + $0x48] sm:$0xff]   ;;  %v2202_v40 = vld [vmem:[#allocation7 + $0x50] sm:$0xff]  }
  0x64   :  { %1706 = vmatpush3.bf16.msra.mxu0 %v2194_v4  ;;  %2022 = vmatprep.subr.bf16.mxu1 %v2388_v1  ;;  %v2203_v41 = vld [vmem:[#allocation7 + $0x58] sm:$0xff]   ;;  %v114_v45 = vld [vmem:[#allocation12 + $0x30] sm:$0xff]  ;;  %v116_v48 = vld [vmem:[#allocation12 + $0x40] sm:$0xff] }
  0x65   :  { %1707 = vmatprep.subr.bf16.mxu0 %v2195_v9  ;;  %v115_v46 = vld [vmem:[#allocation12 + $0x38] sm:$0xff]  ;;  %v117_v49 = vld [vmem:[#allocation12 + $0x48] sm:$0xff]  ;;  %v118_v51 = vld [vmem:[#allocation12 + $0x50] sm:$0xff] }
  0x66   :  { %v152_v11 = vld [vmem:[#allocation2 + $0x8] sm:$0xff]  ;;  %v153_v12 = vld [vmem:[#allocation2 + $0x10] sm:$0xff]  ;;  %v2569_v47 = vpack.c.bf16 %v115_v46, %v114_v45  ;;  %v2573_v50 = vpack.c.bf16 %v117_v49, %v116_v48  ;;  %v119_v52 = vld [vmem:[#allocation12 + $0x58] sm:$0xff] }
  0x67   :  { %v138_v13 = vld [vmem:[#allocation2 + $0x7] sm:$0xff]  ;;  %v156_v14 = vpack.c.bf16 %v153_v12, %v152_v11  ;;  %v139_v16 = vld [vmem:[#allocation2 + $0xf] sm:$0xff]  ;;  %2024 = vmatpush3.bf16.msra.mxu1 %v2557_v29  ;;  %v2577_v53 = vpack.c.bf16 %v119_v52, %v118_v51  ;;  %v123_v58 = vld [vmem:[#allocation12 + $0x78] sm:$0xff]  ;;  %v597_v51 = vlaneseq }
  0x68   :  { %v154_v15 = vld [vmem:[#allocation2 + $0x28] sm:$0xff]  ;;  %v155_v17 = vld [vmem:[#allocation2 + $0x30] sm:$0xff]  ;;  %1708 = vmatpush3.bf16.msra.mxu0 %v2195_v9  ;;  %v142_v19 = vpack.c.bf16 %v139_v16, %v138_v13  ;;  %2025 = vmatprep.subr.bf16.mxu1 %v2388_v1  ;;  %v120_v54 = vld [vmem:[#allocation12 + $0x60] sm:$0xff] }
  0x69   :  { %1709 = vmatprep.mubr.msk.bf16.mxu0 %vm133_vm1, %v156_v14  ;;  %v157_v18 = vpack.c.bf16 %v155_v17, %v154_v15  ;;  %1713 = vmatprep.subr.bf16.mxu0 %v2196_v10  ;;  %v140_v32 = vld [vmem:[#allocation2 + $0x27] sm:$0xff]  ;;  %v141_v33 = vld [vmem:[#allocation2 + $0x2f] sm:$0xff]  ;;  %v598_v52 = vshrl.u32 %v597_v51, 7 }
  0x6a   :  { %v325_v35 = vld [vmem:[#allocation2 + $0x9] sm:$0xff]  ;;  %v326_v36 = vld [vmem:[#allocation2 + $0x11] sm:$0xff]  ;;  %v143_v37 = vpack.c.bf16 %v141_v33, %v140_v32 }
  0x6b   :  { %1710 = vmatmul.mubr.msk.bf16.vlgmr.msra.gmra.mrb[0].mxu0 %vm133_vm1, %v157_v18  ;;  %2027 = vmatpush3.bf16.msra.mxu1 %v2561_v31  ;;  %v329_v39 = vpack.c.bf16 %v326_v36, %v325_v35  ;;  %v327_v42 = vld [vmem:[#allocation2 + $0x29] sm:$0xff]  ;;  %v328_v43 = vld [vmem:[#allocation2 + $0x31] sm:$0xff]  ;;  %v2208_v35 = vld [vmem:[#allocation9 + $0x60] sm:$0xff]  }
  0x6c   :  { %1714 = vmatpush3.bf16.msra.mxu0 %v2196_v10  ;;  %1721 = vmatprep.mubr.msk.bf16.mxu0 %vm133_vm1, %v142_v19  ;;  %v330_v44 = vpack.c.bf16 %v328_v43, %v327_v42  ;;  %v121_v55 = vld [vmem:[#allocation12 + $0x68] sm:$0xff]  ;;  %v122_v57 = vld [vmem:[#allocation12 + $0x70] sm:$0xff] }
  0x6d   :  { %1715 = vmatprep.subr.bf16.mxu0 %v2197_v20  ;;  %2028 = vmatprep.subr.bf16.mxu1 %v2388_v1  ;;  %v2581_v56 = vpack.c.bf16 %v121_v55, %v120_v54  ;;  %v2586_v59 = vpack.c.bf16 %v123_v58, %v122_v57  ;;  %v2205_v32 = vld [vmem:[#allocation9 + $0x48] sm:$0xff]   ;;  %v2206_v33 = vld [vmem:[#allocation9 + $0x50] sm:$0xff]   ;;  %v423_v54 = vld [vmem:[%s2780_s5] sm:$0x1]  ;;  %v2650_v55 = vsub.s32 0, %v598_v52 }
  0x6e   :  { %v2209_v36 = vld [vmem:[#allocation9 + $0x68] sm:$0xff]  }
  0x6f   :  { %2030 = vmatpush3.bf16.msra.mxu1 %v2569_v47 }
  0x70   :  { %1716 = vmatpush3.bf16.msra.mxu0 %v2197_v20  ;;  %2031 = vmatprep.subr.bf16.mxu1 %v2388_v1 }
  0x71   :  { %1717 = vmatprep.subr.bf16.mxu0 %v2198_v23 }
  0x73   :  { %2033 = vmatpush3.bf16.msra.mxu1 %v2573_v50 }
  0x74   :  { %1718 = vmatpush3.bf16.msra.mxu0 %v2198_v23  ;;  %2034 = vmatprep.subr.bf16.mxu1 %v2388_v1 }
  0x75   :  { %1719 = vmatprep.subr.bf16.mxu0 %v2199_v30 }
  0x77   :  { %2036 = vmatpush3.bf16.msra.mxu1 %v2577_v53 }
  0x78   :  { %1720 = vmatpush3.bf16.msra.mxu0 %v2199_v30  ;;  %2037 = vmatprep.subr.bf16.mxu1 %v2388_v1  ;;  %v2204_v30 = vld [vmem:[#allocation9 + $0x40] sm:$0xff]  }
  0x79   :  { %1725 = vmatprep.subr.bf16.mxu0 %v2200_v34 }
  0x7b   :  { %1722 = vmatmul.mubr.msk.bf16.vlgmr.msra.gmra.mrb[0].mxu0 %vm133_vm1, %v143_v37  ;;  %2039 = vmatpush3.bf16.msra.mxu1 %v2581_v56  ;;  %v2210_v37 = vld [vmem:[#allocation9 + $0x70] sm:$0xff]  }
  0x7c   :  { %1726 = vmatpush3.bf16.msra.mxu0 %v2200_v34  ;;  %1733 = vmatprep.mubr.msk.bf16.mxu0 %vm133_vm1, %v329_v39  ;;  %v2207_v34 = vld [vmem:[#allocation9 + $0x58] sm:$0xff]   ;;  %v2212_v39 = vld [vmem:[#allocation9] sm:$0xff]  }
  0x7d   :  { %1727 = vmatprep.subr.bf16.mxu0 %v2201_v38  ;;  %2040 = vmatprep.subr.bf16.mxu1 %v2388_v1 }
  0x7f   :  { %2042 = vmatpush3.bf16.msra.mxu1 %v2586_v59 }
  0x80   :  { %1728 = vmatpush3.bf16.msra.mxu0 %v2201_v38  ;;  %2043 = vmatprep.subr.bf16.mxu1 %v2388_v1  ;;  %v2211_v38 = vld [vmem:[#allocation9 + $0x78] sm:$0xff]  }
  0x81   :  { %1729 = vmatprep.subr.bf16.mxu0 %v2202_v40 }
  0x84   :  { %1730 = vmatpush3.bf16.msra.mxu0 %v2202_v40 }
  0x85   :  { %1731 = vmatprep.subr.bf16.mxu0 %v2203_v41 }
  0x88   :  { %1732 = vmatpush3.bf16.msra.mxu0 %v2203_v41 }
  0x89   :  { %1807 = vmatprep.subr.bf16.mxu0 %v2204_v30 }
  0x8b   :  { %1734 = vmatmul.mubr.msk.bf16.vlgmr.msra.gmra.mrb[0].mxu0 %vm133_vm1, %v330_v44 }
  0x8c   :  { %1808 = vmatpush3.bf16.msra.mxu0 %v2204_v30  ;;  %v2217_v30 = vld [vmem:[#allocation9 + $0x28] sm:$0xff]  }
  0x8d   :  { %1809 = vmatprep.subr.bf16.mxu0 %v2205_v32 }
  0x90   :  { %1810 = vmatpush3.bf16.msra.mxu0 %v2205_v32  ;;  %v2218_v32 = vld [vmem:[#allocation9 + $0x30] sm:$0xff]  }
  0x91   :  { %1811 = vmatprep.subr.bf16.mxu0 %v2206_v33 }
  0x94   :  { %1812 = vmatpush3.bf16.msra.mxu0 %v2206_v33  ;;  %v2219_v33 = vld [vmem:[#allocation9 + $0x38] sm:$0xff]  }
  0x95   :  { %1813 = vmatprep.subr.bf16.mxu0 %v2207_v34 }
  0x98   :  { %1814 = vmatpush3.bf16.msra.mxu0 %v2207_v34  ;;  %v2220_v34 = vld [vmem:[#allocation9 + $0x80] sm:$0xff]  }
  0x99   :  { %1815 = vmatprep.subr.bf16.mxu0 %v2208_v35 }
  0x9c   :  { %1816 = vmatpush3.bf16.msra.mxu0 %v2208_v35 }
  0x9d   :  { %1817 = vmatprep.subr.bf16.mxu0 %v2209_v36 }
  0xa0   :  { %1818 = vmatpush3.bf16.msra.mxu0 %v2209_v36 }
  0xa1   :  { %1819 = vmatprep.subr.bf16.mxu0 %v2210_v37 }
  0xa4   :  { %1820 = vmatpush3.bf16.msra.mxu0 %v2210_v37 }
  0xa5   :  { %1821 = vmatprep.subr.bf16.mxu0 %v2211_v38 }
  0xa8   :  { %1822 = vmatpush3.bf16.msra.mxu0 %v2211_v38 }
  0xa9   :  { %1827 = vmatprep.subr.bf16.mxu0 %v2212_v39 }
 0x15e   :  { %v2591_v60 = vpop.f32.mrb[0].mxu0 }
 0x15f   :  { %v2593_v61 = vpop.f32.mrb[1].mxu0  ;;  %v436_v9 = vmul.f32 %v2591_v60, %v2591_v60 }
 0x160   :  { %v2595_v62 = vpop.f32.mrb[2].mxu0  ;;  %v434_v2 = vmul.f32 %v2593_v61, %v2593_v61 }
 0x161   :  { %v2597_v63 = vpop.f32.mrb[3].mxu0  ;;  %v437_v12 = vmul.f32 %v2595_v62, %v2595_v62 }
 0x162   :  { %v425_v3 = vadd.f32 %v2597_v63, %v2593_v61  ;;  %v435_v4 = vmul.f32 %v2597_v63, %v2597_v63 }
 0x164   :  { %v426_v10 = vadd.f32 %v2591_v60, %v425_v3  ;;  %v438_v11 = vadd.f32 %v435_v4, %v434_v2  ;;  %v424_v2 = vld [vmem:[%s2781_s6] sm:$0x1] }
 0x166   :  { %v427_v13 = vadd.f32 %v2595_v62, %v426_v10  ;;  %v439_v14 = vadd.f32 %v438_v11, %v436_v9 }
 0x168   :  { %v428_v15 = vrot.slane %v427_v13, 4  ;;  %v440_v16 = vadd.f32 %v439_v14, %v437_v12 }
 0x16a   :  { %v429_v17 = vadd.f32 %v428_v15, %v427_v13  ;;  %v441_v22 = vrot.slane %v440_v16, 4 }
 0x16c   :  { %v430_v18 = vrot.slane %v429_v17, 2  ;;  %v442_v23 = vadd.f32 %v441_v22, %v440_v16 }
 0x16e   :  { %v431_v19 = vadd.f32 %v430_v18, %v429_v17  ;;  %v443_v25 = vrot.slane %v442_v23, 2 }
 0x170   :  { %v432_v20 = vrot.slane %v431_v19, 1  ;;  %v444_v26 = vadd.f32 %v443_v25, %v442_v23  ;;  %v2213_v23 = vld [vmem:[#allocation9 + $0x8] sm:$0xff]  }
 0x172   :  { %v433_v21 = vadd.f32 %v432_v20, %v431_v19  ;;  %v445_v27 = vrot.slane %v444_v26, 1 }
 0x174   :  { %1770 = vmatmul.mubr.f32.vlgmr.msra.gmra.mrb[0].mxu1 %v433_v21  ;;  %v446_v28 = vadd.f32 %v445_v27, %v444_v26  ;;  %v2215_v27 = vld [vmem:[#allocation9 + $0x18] sm:$0xff]  }
 0x175   :  { %2045 = vmatpush3.bf16.msra.mxu1 %v2553_v24  ;;  %1804 = vmatprep.mubr.msk.f32.mxu1 %vm2389_vm2, %v2387_v0 }
 0x176   :  { %2046 = vmatprep.subr.bf16.mxu1 %v2388_v1 }
 0x179   :  { %2048 = vmatpush3.bf16.msra.mxu1 %v2557_v29 }
 0x17a   :  { %2049 = vmatprep.subr.bf16.mxu1 %v2388_v1 }
 0x17d   :  { %2051 = vmatpush3.bf16.msra.mxu1 %v2561_v31 }
 0x17e   :  { %2052 = vmatprep.subr.bf16.mxu1 %v2388_v1 }
 0x181   :  { %2054 = vmatpush3.bf16.msra.mxu1 %v2569_v47 }
 0x182   :  { %2055 = vmatprep.subr.bf16.mxu1 %v2388_v1 }
 0x185   :  { %2057 = vmatpush3.bf16.msra.mxu1 %v2573_v50 }
 0x186   :  { %2058 = vmatprep.subr.bf16.mxu1 %v2388_v1 }
 0x189   :  { %2060 = vmatpush3.bf16.msra.mxu1 %v2577_v53 }
 0x18a   :  { %2061 = vmatprep.subr.bf16.mxu1 %v2388_v1 }
 0x18d   :  { %2063 = vmatpush3.bf16.msra.mxu1 %v2581_v56 }
 0x18e   :  { %2064 = vmatprep.subr.bf16.mxu1 %v2388_v1 }
 0x191   :  { %2066 = vmatpush3.bf16.msra.mxu1 %v2586_v59 }
 0x192   :  { %2067 = vmatprep.subr.bf16.mxu1 %v2388_v1 }
 0x194   :  { %1805 = vmatmul.mubr.f32.vlgmr.msra.gmra.mrb[2].mxu1 %v446_v28  ;;  %v2216_v28 = vld [vmem:[#allocation9 + $0x20] sm:$0xff]  }
 0x195   :  { %2069 = vmatpush3.bf16.msra.mxu1 %v2553_v24  ;;  %1899 = vmatprep.mubr.msk.f32.mxu1 %vm2389_vm2, %v2387_v0 }
 0x196   :  { %2070 = vmatprep.subr.bf16.mxu1 %v2388_v1 }
 0x199   :  { %2072 = vmatpush3.bf16.msra.mxu1 %v2557_v29 }
 0x19a   :  { %2073 = vmatprep.subr.bf16.mxu1 %v2388_v1 }
 0x19d   :  { %2075 = vmatpush3.bf16.msra.mxu1 %v2561_v31 }
 0x19e   :  { %2076 = vmatprep.subr.bf16.mxu1 %v2388_v1 }
 0x1a1   :  { %2078 = vmatpush3.bf16.msra.mxu1 %v2569_v47 }
 0x1a2   :  { %2079 = vmatprep.subr.bf16.mxu1 %v2388_v1 }
 0x1a5   :  { %2081 = vmatpush3.bf16.msra.mxu1 %v2573_v50 }
 0x1a6   :  { %2082 = vmatprep.subr.bf16.mxu1 %v2388_v1 }
 0x1a9   :  { %2084 = vmatpush3.bf16.msra.mxu1 %v2577_v53 }
 0x1aa   :  { %2085 = vmatprep.subr.bf16.mxu1 %v2388_v1 }
 0x1ad   :  { %2087 = vmatpush3.bf16.msra.mxu1 %v2581_v56 }
 0x1ae   :  { %2088 = vmatprep.subr.bf16.mxu1 %v2388_v1 }
 0x1b1   :  { %2090 = vmatpush3.bf16.msra.mxu1 %v2586_v59 }
 0x1b2   :  { %2091 = vmatprep.subr.bf16.mxu1 %v2388_v1 }
 0x247   :  { %v513_v40 = vpop.f32.mrb[0].mxu1 }
 0x248   :  { %v1771_v41 = vpop.f32.mrb[1].mxu1  ;;  %v517_v42 = vmul.f32 0.001953125, %v513_v40  ;;  %v2221_v40 = vld [vmem:[#allocation9 + $0x88] sm:$0xff]  }
 0x24a   :  { %v589_v44 = vmul.f32 %v517_v42, %v517_v42 }
 0x267   :  { %v584_v43 = vpop.f32.mrb[2].mxu1 }
 0x268   :  { %v588_v45 = vmul.f32 0.001953125, %v584_v43  ;;  %v1806_v46 = vpop.f32.mrb[3].mxu1  ;;  %v2223_v43 = vld [vmem:[#allocation9 + $0x98] sm:$0xff]  }
 0x269   :  { %v2226_v46 = vld [vmem:[#allocation9 + $0xb0] sm:$0xff]  }
 0x26a   :  { %v590_v48 = vsub.f32 %v588_v45, %v589_v44  ;;  %v2224_v44 = vld [vmem:[#allocation9 + $0xa0] sm:$0xff]   ;;  %v2225_v45 = vld [vmem:[#allocation9 + $0xa8] sm:$0xff]  }
 0x26c   :  { %v591_v49 = vadd.f32 1e-05, %v590_v48  ;;  %v2227_v48 = vld [vmem:[#allocation9 + $0xb8] sm:$0xff]  }
 0x26e   :  { %2232 = vrsqrt.f32 %v591_v49 }
 0x278   :  { %v2233_v57 = vpop.eup %2232 }
 0x279   :  { %v593_v58 = vmul.f32 %v2233_v57, %v423_v54 }
 0x27b   :  { %v594_v3 = vmul.f32 %v593_v58, %v517_v42  ;;  %v600_v4 = vrot.slane %v593_v58, %v2650_v55  ;;  %v2222_v42 = vld [vmem:[#allocation9 + $0x90] sm:$0xff]  }
 0x27d   :  { %v595_v9 = vsub.f32 %v424_v2, %v594_v3  ;;  %v602_v10 = vmul.f32 %v600_v4, %v2593_v61  ;;  %v603_v11 = vmul.f32 %v600_v4, %v2597_v63  ;;  %v604_v12 = vmul.f32 %v2591_v60, %v600_v4  ;;  %v2214_v60 = vld [vmem:[#allocation9 + $0x10] sm:$0xff]  }
 0x27e   :  { %v605_v13 = vmul.f32 %v2595_v62, %v600_v4 }
 0x27f   :  { %v610_v14 = vrot.slane %v595_v9, %v2650_v55 }
 0x281   :  { %v612_v15 = vadd.f32 %v610_v14, %v602_v10  ;;  %v613_v16 = vadd.f32 %v610_v14, %v603_v11  ;;  %v614_v17 = vadd.f32 %v610_v14, %v604_v12  ;;  %v615_v18 = vadd.f32 %v610_v14, %v605_v13 }
 0x283   :  { %v616_v19 = vmax.f32 %v612_v15, 0.0  ;;  %v617_v20 = vmax.f32 %v613_v16, 0.0  ;;  %v618_v21 = vmax.f32 %v614_v17, 0.0  ;;  %v619_v22 = vmax.f32 %v615_v18, 0.0 }
 0x285   :  { %624 = vst [vmem:[#allocation3 + $0x8] sm:$0xff] %v616_v19  ;;  %625 = vst [vmem:[#allocation3 + $0x10] sm:$0xff] %v617_v20  ;;  %v654_v61 = vpack.c.bf16 %v617_v20, %v616_v19  ;;  %v655_v63 = vpack.c.bf16 %v619_v22, %v618_v21 }
 0x286   :  { %626 = vst [vmem:[#allocation3 + $0x28] sm:$0xff] %v618_v21  ;;  %627 = vst [vmem:[#allocation3 + $0x30] sm:$0xff] %v619_v22 }
 0x287   :  { %1823 = vmatprep.mubr.bf16.mxu0 %v654_v61 }
 0x288   :  { %1824 = vmatmul.mubr.bf16.vlgmr.msra.gmra.mrb[4].mxu0 %v655_v63 }
 0x289   :  { %1828 = vmatpush3.bf16.msra.mxu0 %v2212_v39 }
 0x28a   :  { %1829 = vmatprep.subr.bf16.mxu0 %v2213_v23 }
 0x28c   :  { %v628_v62 = vld [vmem:[#allocation3 + $0x7] sm:$0xff]  ;;  %v629_v25 = vld [vmem:[#allocation3 + $0xf] sm:$0xff] }
 0x28d   :  { %v632_v26 = vpack.c.bf16 %v629_v25, %v628_v62  ;;  %1830 = vmatpush3.bf16.msra.mxu0 %v2213_v23  ;;  %v630_v35 = vld [vmem:[#allocation3 + $0x27] sm:$0xff]  ;;  %v631_v36 = vld [vmem:[#allocation3 + $0x2f] sm:$0xff] }
 0x28e   :  { %1831 = vmatprep.subr.bf16.mxu0 %v2214_v60  ;;  %v867_v37 = vld [vmem:[#allocation3 + $0x9] sm:$0xff]  ;;  %v868_v38 = vld [vmem:[#allocation3 + $0x11] sm:$0xff]  ;;  %v633_v39 = vpack.c.bf16 %v631_v36, %v630_v35  ;;  %v2228_v25 = vld [vmem:[#allocation10] sm:$0xff]  }
 0x28f   :  { %1843 = vmatprep.mubr.bf16.mxu0 %v632_v26  ;;  %v871_v41 = vpack.c.bf16 %v868_v38, %v867_v37  ;;  %v869_v49 = vld [vmem:[#allocation3 + $0x29] sm:$0xff]  ;;  %v870_v51 = vld [vmem:[#allocation3 + $0x31] sm:$0xff]  ;;  %v1164_v26 = vpack.c.bf16 %v2537_v6, %v2535_v5 }
 0x290   :  { %v872_v52 = vpack.c.bf16 %v870_v51, %v869_v49 }
 0x291   :  { %1832 = vmatpush3.bf16.msra.mxu0 %v2214_v60 }
 0x292   :  { %1833 = vmatprep.subr.bf16.mxu0 %v2215_v27 }
 0x295   :  { %1834 = vmatpush3.bf16.msra.mxu0 %v2215_v27 }
 0x296   :  { %1835 = vmatprep.subr.bf16.mxu0 %v2216_v28 }
 0x299   :  { %1836 = vmatpush3.bf16.msra.mxu0 %v2216_v28  ;;  %v2229_v28 = vld [vmem:[#allocation10 + $0x8] sm:$0xff]  }
 0x29a   :  { %1837 = vmatprep.subr.bf16.mxu0 %v2217_v30 }
 0x29d   :  { %1838 = vmatpush3.bf16.msra.mxu0 %v2217_v30  ;;  %v2230_v30 = vld [vmem:[#allocation10 + $0x10] sm:$0xff]  }
 0x29e   :  { %1839 = vmatprep.subr.bf16.mxu0 %v2218_v32 }
 0x2a1   :  { %1840 = vmatpush3.bf16.msra.mxu0 %v2218_v32  ;;  %v2231_v32 = vld [vmem:[#allocation10 + $0x18] sm:$0xff]  }
 0x2a2   :  { %1841 = vmatprep.subr.bf16.mxu0 %v2219_v33 }
 0x2a5   :  { %1842 = vmatpush3.bf16.msra.mxu0 %v2219_v33  ;;  %v1165_v33 = vpack.c.bf16 %v2545_v8, %v2543_v7 }
 0x2a6   :  { %1847 = vmatprep.subr.bf16.mxu0 %v2220_v34 }
 0x2a8   :  { %1844 = vmatmul.mubr.bf16.vlgmr.msra.gmra.mrb[4].mxu0 %v633_v39 }
 0x2a9   :  { %1848 = vmatpush3.bf16.msra.mxu0 %v2220_v34  ;;  %1863 = vmatprep.mubr.bf16.mxu0 %v871_v41 }
 0x2aa   :  { %1849 = vmatprep.subr.bf16.mxu0 %v2221_v40 }
 0x2ad   :  { %1850 = vmatpush3.bf16.msra.mxu0 %v2221_v40 }
 0x2ae   :  { %1851 = vmatprep.subr.bf16.mxu0 %v2222_v42 }
 0x2b1   :  { %1852 = vmatpush3.bf16.msra.mxu0 %v2222_v42 }
 0x2b2   :  { %1853 = vmatprep.subr.bf16.mxu0 %v2223_v43 }
 0x2b5   :  { %1854 = vmatpush3.bf16.msra.mxu0 %v2223_v43 }
 0x2b6   :  { %1855 = vmatprep.subr.bf16.mxu0 %v2224_v44 }
 0x2b9   :  { %1856 = vmatpush3.bf16.msra.mxu0 %v2224_v44 }
 0x2ba   :  { %1857 = vmatprep.subr.bf16.mxu0 %v2225_v45 }
 0x2bd   :  { %1858 = vmatpush3.bf16.msra.mxu0 %v2225_v45 }
 0x2be   :  { %1859 = vmatprep.subr.bf16.mxu0 %v2226_v46 }
 0x2c1   :  { %1860 = vmatpush3.bf16.msra.mxu0 %v2226_v46 }
 0x2c2   :  { %1861 = vmatprep.subr.bf16.mxu0 %v2227_v48 }
 0x2c5   :  { %1862 = vmatpush3.bf16.msra.mxu0 %v2227_v48 }
 0x2c6   :  { %2115 = vmatprep.subr.bf16.mxu0 %v2388_v1 }
 0x2c8   :  { %1864 = vmatmul.mubr.bf16.vlgmr.msra.gmra.mrb[4].mxu0 %v872_v52 }
 0x2c9   :  { %2117 = vmatpush3.bf16.msra.mxu0 %v2553_v24  ;;  %1981 = vmatprep.mubr.msk.f32.mxu0 %vm2389_vm2, %v2387_v0 }
 0x2ca   :  { %2118 = vmatprep.subr.bf16.mxu0 %v2388_v1 }
 0x2cd   :  { %2120 = vmatpush3.bf16.msra.mxu0 %v2557_v29 }
 0x2ce   :  { %2121 = vmatprep.subr.bf16.mxu0 %v2388_v1 }
 0x2d1   :  { %2123 = vmatpush3.bf16.msra.mxu0 %v2561_v31 }
 0x2d2   :  { %2124 = vmatprep.subr.bf16.mxu0 %v2388_v1 }
 0x2d5   :  { %2126 = vmatpush3.bf16.msra.mxu0 %v2569_v47 }
 0x2d6   :  { %2127 = vmatprep.subr.bf16.mxu0 %v2388_v1 }
 0x2d9   :  { %2129 = vmatpush3.bf16.msra.mxu0 %v2573_v50 }
 0x2da   :  { %2130 = vmatprep.subr.bf16.mxu0 %v2388_v1 }
 0x2dd   :  { %2132 = vmatpush3.bf16.msra.mxu0 %v2577_v53 }
 0x2de   :  { %2133 = vmatprep.subr.bf16.mxu0 %v2388_v1 }
 0x2e1   :  { %2135 = vmatpush3.bf16.msra.mxu0 %v2581_v56 }
 0x2e2   :  { %2136 = vmatprep.subr.bf16.mxu0 %v2388_v1 }
 0x2e5   :  { %2138 = vmatpush3.bf16.msra.mxu0 %v2586_v59 }
 0x39b   :  { %v2679_v54 = vpop.f32.mrb[4].mxu0 }
 0x39c   :  { %v2681_v57 = vpop.f32.mrb[5].mxu0  ;;  %v1004_v10 = vmul.f32 %v2679_v54, %v2679_v54 }
 0x39d   :  { %v2683_v58 = vpop.f32.mrb[6].mxu0  ;;  %v1002_v3 = vmul.f32 %v2681_v57, %v2681_v57 }
 0x39e   :  { %v2685_v2 = vpop.f32.mrb[7].mxu0  ;;  %v1005_v13 = vmul.f32 %v2683_v58, %v2683_v58 }
 0x39f   :  { %v993_v4 = vadd.f32 %v2685_v2, %v2681_v57  ;;  %v1003_v9 = vmul.f32 %v2685_v2, %v2685_v2 }
 0x3a1   :  { %v994_v11 = vadd.f32 %v2679_v54, %v993_v4  ;;  %v1006_v12 = vadd.f32 %v1003_v9, %v1002_v3 }
 0x3a3   :  { %v995_v14 = vadd.f32 %v2683_v58, %v994_v11  ;;  %v1007_v15 = vadd.f32 %v1006_v12, %v1004_v10 }
 0x3a5   :  { %v996_v16 = vrot.slane %v995_v14, 4  ;;  %v1008_v17 = vadd.f32 %v1007_v15, %v1005_v13 }
 0x3a7   :  { %v997_v18 = vadd.f32 %v996_v16, %v995_v14  ;;  %v1009_v61 = vrot.slane %v1008_v17, 4 }
 0x3a9   :  { %v998_v19 = vrot.slane %v997_v18, 2  ;;  %v1010_v63 = vadd.f32 %v1009_v61, %v1008_v17 }
 0x3ab   :  { %v999_v20 = vadd.f32 %v998_v19, %v997_v18  ;;  %v1011_v23 = vrot.slane %v1010_v63, 2 }
 0x3ad   :  { %v1000_v21 = vrot.slane %v999_v20, 1  ;;  %v1012_v60 = vadd.f32 %v1011_v23, %v1010_v63 }
 0x3af   :  { %v1001_v22 = vadd.f32 %v1000_v21, %v999_v20  ;;  %v1013_v62 = vrot.slane %v1012_v60, 1 }
 0x3b1   :  { %1900 = vmatmul.mubr.f32.vlgmr.msra.gmra.mrb[4].mxu1 %v1001_v22  ;;  %v1014_v27 = vadd.f32 %v1013_v62, %v1012_v60 }
 0x3b2   :  { %2093 = vmatpush3.bf16.msra.mxu1 %v2553_v24  ;;  %1934 = vmatprep.mubr.msk.f32.mxu1 %vm2389_vm2, %v2387_v0 }
 0x3b3   :  { %2094 = vmatprep.subr.bf16.mxu1 %v2388_v1 }
 0x3b6   :  { %2096 = vmatpush3.bf16.msra.mxu1 %v2557_v29 }
 0x3b7   :  { %2097 = vmatprep.subr.bf16.mxu1 %v2388_v1 }
 0x3ba   :  { %2099 = vmatpush3.bf16.msra.mxu1 %v2561_v31 }
 0x3bb   :  { %2100 = vmatprep.subr.bf16.mxu1 %v2388_v1 }
 0x3be   :  { %2102 = vmatpush3.bf16.msra.mxu1 %v2569_v47 }
 0x3bf   :  { %2103 = vmatprep.subr.bf16.mxu1 %v2388_v1 }
 0x3c2   :  { %2105 = vmatpush3.bf16.msra.mxu1 %v2573_v50 }
 0x3c3   :  { %2106 = vmatprep.subr.bf16.mxu1 %v2388_v1 }
 0x3c6   :  { %2108 = vmatpush3.bf16.msra.mxu1 %v2577_v53 }
 0x3c7   :  { %2109 = vmatprep.subr.bf16.mxu1 %v2388_v1 }
 0x3ca   :  { %2111 = vmatpush3.bf16.msra.mxu1 %v2581_v56 }
 0x3cb   :  { %2112 = vmatprep.subr.bf16.mxu1 %v2388_v1 }
 0x3ce   :  { %2114 = vmatpush3.bf16.msra.mxu1 %v2586_v59 }
 0x3cf   :  { %1937 = vmatprep.subr.bf16.mxu1 %v2228_v25 }
 0x3d1   :  { %1935 = vmatmul.mubr.f32.vlgmr.msra.gmra.mrb[6].mxu1 %v1014_v27 }
 0x3d2   :  { %1938 = vmatpush3.bf16.msra.mxu1 %v2228_v25  ;;  %1945 = vmatprep.mubr.msk.bf16.mxu1 %vm133_vm1, %v1164_v26 }
 0x3d3   :  { %1939 = vmatprep.subr.bf16.mxu1 %v2229_v28 }
 0x3d6   :  { %1940 = vmatpush3.bf16.msra.mxu1 %v2229_v28 }
 0x3d7   :  { %1941 = vmatprep.subr.bf16.mxu1 %v2230_v30 }
 0x3da   :  { %1942 = vmatpush3.bf16.msra.mxu1 %v2230_v30  ;;  %v1253_v30 = vld [vmem:[%s2784_s9] sm:$0x1]  ;;  %s2390_s9 = smov [#allocation13]  }
 0x3db   :  { %1943 = vmatprep.subr.bf16.mxu1 %v2231_v32  ;;  %s1483_s12 = sshll.u32 %s2390_s9, 4  ;;  %s1484_s12 = int_to_ptr.vmem [resolvable:$true] %s1483_s12 }
 0x3dc   :  { %p2353_p13 = scmp.lt.s32.totalorder %s1484_s12, %s1484_s12 }
 0x3de   :  { %1944 = vmatpush3.bf16.msra.mxu1 %v2231_v32 }
 0x3df   :  { %2139 = vmatprep.subr.bf16.mxu1 %v2388_v1 }
 0x3e1   :  { %1946 = vmatmul.mubr.msk.bf16.vlgmr.msra.gmra.mrb[8].mxu1 %vm133_vm1, %v1165_v33 }
 0x3e2   :  { %2141 = vmatpush3.bf16.msra.mxu1 %v2553_v24  ;;  %2016 = vmatprep.mubr.msk.f32.mxu1 %vm2389_vm2, %v2387_v0 }
 0x3e3   :  { %2142 = vmatprep.subr.bf16.mxu1 %v2388_v1 }
 0x3e6   :  { %2144 = vmatpush3.bf16.msra.mxu1 %v2557_v29 }
 0x3e7   :  { %2145 = vmatprep.subr.bf16.mxu1 %v2388_v1 }
 0x3ea   :  { %2147 = vmatpush3.bf16.msra.mxu1 %v2561_v31 }
 0x3eb   :  { %2148 = vmatprep.subr.bf16.mxu1 %v2388_v1 }
 0x3ee   :  { %2150 = vmatpush3.bf16.msra.mxu1 %v2569_v47 }
 0x3ef   :  { %2151 = vmatprep.subr.bf16.mxu1 %v2388_v1 }
 0x3f2   :  { %2153 = vmatpush3.bf16.msra.mxu1 %v2573_v50  ;;  %v991_v50 = vld [vmem:[%s2782_s7] sm:$0x1] }
 0x3f3   :  { %2154 = vmatprep.subr.bf16.mxu1 %v2388_v1 }
 0x3f6   :  { %2156 = vmatpush3.bf16.msra.mxu1 %v2577_v53 }
 0x3f7   :  { %2157 = vmatprep.subr.bf16.mxu1 %v2388_v1 }
 0x3fa   :  { %2159 = vmatpush3.bf16.msra.mxu1 %v2581_v56 }
 0x3fb   :  { %2160 = vmatprep.subr.bf16.mxu1 %v2388_v1 }
 0x3fe   :  { %2162 = vmatpush3.bf16.msra.mxu1 %v2586_v59  ;;  %v992_v59 = vld [vmem:[%s2783_s8] sm:$0x1] }
 0x484   :  { %v1081_v0 = vpop.f32.mrb[4].mxu1 }
 0x485   :  { %v1901_v5 = vpop.f32.mrb[5].mxu1  ;;  %v1085_v6 = vmul.f32 0.001953125, %v1081_v0  ;;  %v1254_v0 = vld [vmem:[%s2785_s10] sm:$0x1]  ;;  %s2348_s10 = scalar_lea.vmem %s1484_s12, 512 }
 0x486   :  { %p2349_p12 = scmp.ne.s32.totalorder %s1484_s12, %s2348_s10  ;;  %p2354_p0 = scmp.lt.s32.totalorder %s2348_s10, %s2348_s10 }
 0x487   :  { %v1157_v8 = vmul.f32 %v1085_v6, %v1085_v6 }
 0x488   :  { %p2355_p1 = por %p2354_p0, %p2353_p13 }
 0x48a   :  { %p2356_p2 = pnand %p2355_p1, %p2349_p12 }
 0x4a4   :  { %v1152_v7 = vpop.f32.mrb[6].mxu1 }
 0x4a5   :  { %v1156_v24 = vmul.f32 0.001953125, %v1152_v7  ;;  %v1936_v29 = vpop.f32.mrb[7].mxu1 }
 0x4a7   :  { %v1158_v31 = vsub.f32 %v1156_v24, %v1157_v8 }
 0x4a9   :  { %v1159_v47 = vadd.f32 1e-05, %v1158_v31 }
 0x4ab   :  { %2234 = vrsqrt.f32 %v1159_v47 }
 0x4b4   :  { %v1947_v53 = vpop.f32.mrb[8].mxu1 }
 0x4b5   :  { %v2235_v56 = vpop.eup %2234  ;;  %v1238_v34 = vpop.f32.mrb[9].mxu1  ;;  %v1266_v42 = vmul.f32 %v1947_v53, %v1947_v53 }
 0x4b6   :  { %v1161_v1 = vmul.f32 %v2235_v56, %v991_v50  ;;  %v1948_v35 = vpop.f32.mrb[10].mxu1  ;;  %v1264_v36 = vmul.f32 %v1238_v34, %v1238_v34 }
 0x4b7   :  { %v1241_v37 = vpop.f32.mrb[11].mxu1  ;;  %v1267_v3 = vmul.f32 %v1948_v35, %v1948_v35 }
 0x4b8   :  { %v1162_v38 = vmul.f32 %v1161_v1, %v1085_v6  ;;  %v1430_v39 = vrot.slane %v1161_v1, %v2650_v55  ;;  %v1255_v40 = vadd.f32 %v1241_v37, %v1238_v34  ;;  %v1265_v41 = vmul.f32 %v1241_v37, %v1241_v37 }
 0x4ba   :  { %v1163_v43 = vsub.f32 %v992_v59, %v1162_v38  ;;  %v1256_v44 = vadd.f32 %v1947_v53, %v1255_v40  ;;  %v1268_v45 = vadd.f32 %v1265_v41, %v1264_v36  ;;  %v1432_v46 = vmul.f32 %v1430_v39, %v2681_v57 }
 0x4bb   :  { %v1433_v48 = vmul.f32 %v1430_v39, %v2685_v2  ;;  %v1434_v49 = vmul.f32 %v2679_v54, %v1430_v39  ;;  %v1435_v51 = vmul.f32 %v2683_v58, %v1430_v39 }
 0x4bc   :  { %v1440_v52 = vrot.slane %v1163_v43, %v2650_v55  ;;  %v1257_v4 = vadd.f32 %v1948_v35, %v1256_v44  ;;  %v1269_v9 = vadd.f32 %v1268_v45, %v1266_v42 }
 0x4be   :  { %v1258_v10 = vrot.slane %v1257_v4, 4  ;;  %v1270_v11 = vadd.f32 %v1269_v9, %v1267_v3  ;;  %v1442_v12 = vadd.f32 %v1440_v52, %v1432_v46  ;;  %v1443_v13 = vadd.f32 %v1440_v52, %v1433_v48 }
 0x4bf   :  { %v1444_v14 = vadd.f32 %v1440_v52, %v1434_v49  ;;  %v1445_v15 = vadd.f32 %v1440_v52, %v1435_v51 }
 0x4c0   :  { %v1259_v16 = vadd.f32 %v1258_v10, %v1257_v4  ;;  %v1271_v17 = vrot.slane %v1270_v11, 4 }
 0x4c2   :  { %v1260_v57 = vrot.slane %v1259_v16, 2  ;;  %v1272_v18 = vadd.f32 %v1271_v17, %v1270_v11 }
 0x4c4   :  { %v1261_v2 = vadd.f32 %v1260_v57, %v1259_v16  ;;  %v1273_v19 = vrot.slane %v1272_v18, 2 }
 0x4c6   :  { %v1262_v54 = vrot.slane %v1261_v2, 1  ;;  %v1274_v20 = vadd.f32 %v1273_v19, %v1272_v18 }
 0x4c8   :  { %v1263_v58 = vadd.f32 %v1262_v54, %v1261_v2  ;;  %v1275_v21 = vrot.slane %v1274_v20, 1 }
 0x4ca   :  { %1982 = vmatmul.mubr.f32.vlgmr.msra.gmra.mrb[8].mxu0 %v1263_v58  ;;  %v1276_v22 = vadd.f32 %v1275_v21, %v1274_v20 }
 0x4cc   :  { %2017 = vmatmul.mubr.f32.vlgmr.msra.gmra.mrb[12].mxu1 %v1276_v22 }
 0x59d   :  { %v1343_v61 = vpop.f32.mrb[8].mxu0 }
 0x59e   :  { %v1347_v63 = vmul.f32 0.001953125, %v1343_v61  ;;  %v1983_v23 = vpop.f32.mrb[9].mxu0 }
 0x59f   :  { %v1414_v60 = vpop.f32.mrb[12].mxu1 }
 0x5a0   :  { %v1419_v62 = vmul.f32 %v1347_v63, %v1347_v63  ;;  %v1418_v25 = vmul.f32 0.001953125, %v1414_v60  ;;  %v2018_v26 = vpop.f32.mrb[13].mxu1 }
 0x5a2   :  { %v1420_v27 = vsub.f32 %v1418_v25, %v1419_v62 }
 0x5a4   :  { %v1421_v28 = vadd.f32 1e-05, %v1420_v27 }
 0x5a6   :  { %2236 = vrsqrt.f32 %v1421_v28 }
 0x5b0   :  { %v2237_v32 = vpop.eup %2236 }
 0x5b1   :  { %v1423_v33 = vmul.f32 %v2237_v32, %v1253_v30 }
 0x5b3   :  { %v1424_v5 = vmul.f32 %v1423_v33, %v1347_v63  ;;  %v1450_v6 = vrot.slane %v1423_v33, %v2650_v55 }
 0x5b5   :  { %v1425_v7 = vsub.f32 %v1254_v0, %v1424_v5  ;;  %v1452_v8 = vmul.f32 %v1450_v6, %v1238_v34  ;;  %v1453_v24 = vmul.f32 %v1450_v6, %v1241_v37  ;;  %v1454_v29 = vmul.f32 %v1947_v53, %v1450_v6 }
 0x5b6   :  { %v1455_v31 = vmul.f32 %v1948_v35, %v1450_v6 }
 0x5b7   :  { %v1460_v47 = vrot.slane %v1425_v7, %v2650_v55 }
 0x5b9   :  { %v1462_v50 = vadd.f32 %v1460_v47, %v1452_v8  ;;  %v1463_v56 = vadd.f32 %v1460_v47, %v1453_v24  ;;  %v1464_v1 = vadd.f32 %v1460_v47, %v1454_v29  ;;  %v1465_v59 = vadd.f32 %v1460_v47, %v1455_v31 }
 0x5bb   :  { %v1466_v36 = vadd.f32 %v1462_v50, %v1442_v12  ;;  %v1467_v38 = vadd.f32 %v1463_v56, %v1443_v13  ;;  %v1468_v39 = vadd.f32 %v1464_v1, %v1444_v14  ;;  %v1469_v40 = vadd.f32 %v1465_v59, %v1445_v15 }
 0x5bd   :  { %v1470_v41 = vmax.f32 %v1466_v36, 0.0  ;;  %v1471_v42 = vmax.f32 %v1467_v38, 0.0  ;;  %v1472_v43 = vmax.f32 %v1468_v39, 0.0  ;;  %v1473_v44 = vmax.f32 %v1469_v40, 0.0 }
 0x5bf   :  { %1474 = vst [vmem:[#allocation13] sm:$0xff] %v1470_v41  ;;  %1475 = vst [vmem:[#allocation13 + $0x8] sm:$0xff] %v1471_v42 }
 0x5c0   :  { %1476 = vst [vmem:[#allocation13 + $0x10] sm:$0xff] %v1472_v43  ;;  %1477 = vst [vmem:[#allocation13 + $0x18] sm:$0xff] %v1473_v44 }
 0x5c1   :  { %2359 = shalt.err (!%p2356_p2)
}
 0x5c2   :  { %s2360_s14 = scalar_lea.hbm %s2786_s11, 512 }
 0x5c3   :  { %p2361_p3 = scmp.ne.s32.totalorder %s2786_s11, %s2360_s14  ;;  %p2364_p4 = scmp.lt.u32.totalorder %s2360_s14, %s2786_s11 }
 0x5c5   :  { %p2366_p5 = pnand %p2364_p4, %p2361_p3 }
 0x5c7   :  { %2369 = shalt.err (!%p2366_p5)
}
 0x5c8   :  { %1489 = dma.vmem_to_hbm [thread:$0]  %s1484_s12, 512, %s2786_s11, [#allocation6], %s2383_s3, %s2383_s3, %s2384_s13  }
 0x5c9   :  { %2376 = dma.done.wait [#allocation6], 512  }
 0x5ca   :  { %2377 = vsyncadd [#allocation6], 4294966784 }
 0x5cb   :  { %1493 = vsyncpa [#allocation5], 1 }
 0x5cc   :  { %1494 = vsyncpa [#allocation8], 1 }
 0x5cd   :  { %1495 = vsyncpa [#allocation11], 1 }
 0x5ce   :  { %1496 = vsyncpa [#allocation6], 1 }

</bundles_post_ra>
